<compile_context>
chip_gen: v6e
topology: v6e:2x2x1
jax: 0.10.0
libtpu: 0.0.40
codegen_flags: <defaults>
</compile_context>

<pallas_src>
import math

import jax
import jax.numpy as jnp
from jax.experimental import pallas as pl
from jax.experimental.pallas import tpu as pltpu

EMBEDDING_DIM = 128       # embedding_dim (lane axis)
NUM_EMBEDDINGS = 64       # num_embeddings
_MAX_TILE_N = 512         # rows of output per grid step (sublane-aligned)


def _round_up(x: int, m: int) -> int:
    return ((x + m - 1) // m) * m


# ---------------------------------------------------------------------------
# Fused kernel: positions -> sinusoidal embedding rows
# ---------------------------------------------------------------------------
def _sinusoidal_kernel(pos_ref, freq_ref, phase_ref, out_ref):
    # pos_ref:   (tile_n, 1)  int32
    # freq_ref:  (1, dim)     float32   inv_freq per lane (col j uses k = j // 2)
    # phase_ref: (1, dim)     float32   0 on even cols, pi/2 on odd cols
    # out_ref:   (tile_n, dim) float32
    pos = pos_ref[...].astype(jnp.float32)                  # (tile_n, 1)
    angle = pos * freq_ref[...] + phase_ref[...]            # (tile_n, dim)
    out_ref[...] = jnp.sin(angle)                           # sin(x+pi/2) == cos(x)


def sinusoidal_embed(positions_flat: jax.Array,
                     inv_freq: jax.Array,
                     phase: jax.Array) -> jax.Array:
    """positions_flat: (N,) int32 -> (N, dim) float32."""
    n = positions_flat.shape[0]
    dim = inv_freq.shape[1]

    # Pick a sublane-aligned tile and pad N to a multiple of it.
    tile_n = min(_MAX_TILE_N, _round_up(max(n, 1), 8))
    n_pad = _round_up(max(n, 1), tile_n)
    pos = positions_flat.astype(jnp.int32)
    if n_pad != n:
        pos = jnp.pad(pos, (0, n_pad - n))
    pos2d = pos.reshape(n_pad, 1)

    out = pl.pallas_call(
        _sinusoidal_kernel,
        out_shape=jax.ShapeDtypeStruct((n_pad, dim), jnp.float32),
        grid_spec=pltpu.PrefetchScalarGridSpec(
            num_scalar_prefetch=0,
            grid=(n_pad // tile_n,),
            in_specs=[
                pl.BlockSpec((tile_n, 1), lambda i: (i, 0)),   # positions tile
                pl.BlockSpec((1, dim), lambda i: (0, 0)),      # inv_freq (resident)
                pl.BlockSpec((1, dim), lambda i: (0, 0)),      # phase    (resident)
            ],
            out_specs=pl.BlockSpec((tile_n, dim), lambda i: (i, 0)),
        ),
        compiler_params=pltpu.CompilerParams(
            dimension_semantics=("parallel",),
        ),
    )(pos2d, inv_freq, phase)

    return out[:n]


# ---------------------------------------------------------------------------
# Module wrapper (mirrors the PyTorch module's __init__ / forward)
# ---------------------------------------------------------------------------
class SinusoidalPositionalEmbedding:
    def __init__(self, embedding_dim: int, num_embeddings: int):
        assert embedding_dim % 2 == 0, "embedding_dim must be even"
        self.embedding_dim = embedding_dim
        self.num_embeddings = num_embeddings

        # Position-independent per-lane constants (computed once, host side).
        half = jnp.arange(0, embedding_dim, 2, dtype=jnp.float32)
        inv_freq_half = jnp.exp(half * (-math.log(10000.0) / embedding_dim))
        # column j uses frequency index k = j // 2
        self.inv_freq = jnp.repeat(inv_freq_half, 2).reshape(1, embedding_dim)
        # 0 on even columns (sin), +pi/2 on odd columns (cos)
        self.phase = (
            (jnp.arange(embedding_dim, dtype=jnp.float32) % 2.0) * (math.pi / 2.0)
        ).reshape(1, embedding_dim)

        # Parity with the PyTorch register_buffer (one-time, plain jnp; the
        # fused forward does not read it).
        pos = jnp.arange(num_embeddings, dtype=jnp.float32)[:, None]
        pe = jnp.zeros((num_embeddings, embedding_dim), jnp.float32)
        pe = pe.at[:, 0::2].set(jnp.sin(pos * inv_freq_half))
        pe = pe.at[:, 1::2].set(jnp.cos(pos * inv_freq_half))
        self.pos_emb = pe

    def __call__(self, positions: jax.Array) -> jax.Array:
        pos_flat = positions.reshape(-1).astype(jnp.int32)
        emb = sinusoidal_embed(pos_flat, self.inv_freq, self.phase)
        return emb.reshape(*positions.shape, self.embedding_dim)


# ---------------------------------------------------------------------------
# Pure-JAX reference (correctness check only)
# ---------------------------------------------------------------------------
def _reference(positions: jax.Array, num_embeddings: int, embedding_dim: int):
    pos = jnp.arange(num_embeddings, dtype=jnp.float32)[:, None]
    div = jnp.exp(
        jnp.arange(0, embedding_dim, 2, dtype=jnp.float32)
        * (-math.log(10000.0) / embedding_dim)
    )
    pe = jnp.zeros((num_embeddings, embedding_dim), jnp.float32)
    pe = pe.at[:, 0::2].set(jnp.sin(pos * div))
    pe = pe.at[:, 1::2].set(jnp.cos(pos * div))
    flat = jnp.take(pe, positions.reshape(-1), axis=0)
    return flat.reshape(*positions.shape, embedding_dim)


if __name__ == "__main__":
    key = jax.random.PRNGKey(0)
    module = SinusoidalPositionalEmbedding(EMBEDDING_DIM, NUM_EMBEDDINGS)

    # positions: (batch=2, seq=8) int32 indices into the embedding table
    positions = jax.random.randint(
        key, (2, 8), minval=0, maxval=NUM_EMBEDDINGS, dtype=jnp.int32
    )
    out = jax.block_until_ready(module(positions))
    ref = _reference(positions, NUM_EMBEDDINGS, EMBEDDING_DIM)
    assert out.shape == (*positions.shape, EMBEDDING_DIM), out.shape
    assert out.dtype == jnp.float32, out.dtype
    assert jnp.allclose(out, ref, atol=1e-3, rtol=1e-3), "mismatch vs reference"

    # Second shape with N not a multiple of 8 to exercise the padding path.
    positions2 = jax.random.randint(
        jax.random.PRNGKey(1), (3, 5), minval=0, maxval=NUM_EMBEDDINGS, dtype=jnp.int32
    )
    out2 = jax.block_until_ready(module(positions2))
    ref2 = _reference(positions2, NUM_EMBEDDINGS, EMBEDDING_DIM)
    assert out2.shape == (*positions2.shape, EMBEDDING_DIM), out2.shape
    assert jnp.allclose(out2, ref2, atol=1e-3, rtol=1e-3), "mismatch vs reference (padded)"

    print("KERNEL_OK")
</pallas_src>

<mosaic_0001>
module attributes {stable_mosaic.version = 11 : i64} {
  func.func @_sinusoidal_kernel(%arg0: i32, %arg1: memref<16x1xi32, #tpu.memory_space<vmem>>, %arg2: memref<1x128xf32, #tpu.memory_space<vmem>>, %arg3: memref<1x128xf32, #tpu.memory_space<vmem>>, %arg4: memref<16x128xf32, #tpu.memory_space<vmem>>) attributes {dimension_semantics = [#tpu.dimension_semantics<parallel>], iteration_bounds = array<i64: 1>, scalar_prefetch = 0 : i64, scratch_operands = 0 : i64, tpu.core_type = #tpu.core_type<tc>, window_params = [{transform_indices = @transform_0, window_bounds = array<i64: 16, 1>}, {pipeline_mode = #tpu.pipeline_mode<synchronous>, transform_indices = @transform_1, window_bounds = array<i64: 1, 128>}, {pipeline_mode = #tpu.pipeline_mode<synchronous>, transform_indices = @transform_2, window_bounds = array<i64: 1, 128>}, {transform_indices = @transform_3, window_bounds = array<i64: 16, 128>}]} {
    %c0 = arith.constant 0 : index
    %c0_0 = arith.constant 0 : index
    %0 = vector.load %arg1[%c0, %c0_0] : memref<16x1xi32, #tpu.memory_space<vmem>>, vector<16x1xi32>
    %1 = arith.sitofp %0 : vector<16x1xi32> to vector<16x1xf32>
    %c0_1 = arith.constant 0 : index
    %c0_2 = arith.constant 0 : index
    %2 = vector.load %arg2[%c0_1, %c0_2] : memref<1x128xf32, #tpu.memory_space<vmem>>, vector<1x128xf32>
    %3 = vector.broadcast %1 : vector<16x1xf32> to vector<16x128xf32>
    %4 = vector.broadcast %2 : vector<1x128xf32> to vector<16x128xf32>
    %5 = arith.mulf %3, %4 : vector<16x128xf32>
    %c0_3 = arith.constant 0 : index
    %c0_4 = arith.constant 0 : index
    %6 = vector.load %arg3[%c0_3, %c0_4] : memref<1x128xf32, #tpu.memory_space<vmem>>, vector<1x128xf32>
    %7 = vector.broadcast %6 : vector<1x128xf32> to vector<16x128xf32>
    %8 = arith.addf %5, %7 : vector<16x128xf32>
    %9 = math.sin %8 : vector<16x128xf32>
    %c0_5 = arith.constant 0 : index
    %c0_6 = arith.constant 0 : index
    %10 = vector.load %arg4[%c0_5, %c0_6] : memref<16x128xf32, #tpu.memory_space<vmem>>, vector<16x128xf32>
    tpu.vector_store %arg4[%c0_5, %c0_6], %9 {strides = array<i32>} : memref<16x128xf32, #tpu.memory_space<vmem>>, vector<16x128xf32>,
    return
  }
  func.func @transform_0(%arg0: i32) -> (i32, i32) {
    %c0_i32 = arith.constant 0 : i32
    %c0_i32_0 = arith.constant 0 : i32
    return %arg0, %c0_i32 : i32, i32
  }
  func.func @transform_1(%arg0: i32) -> (i32, i32) {
    %c0_i32 = arith.constant 0 : i32
    %c0_i32_0 = arith.constant 0 : i32
    %c0_i32_1 = arith.constant 0 : i32
    return %c0_i32, %c0_i32_0 : i32, i32
  }
  func.func @transform_2(%arg0: i32) -> (i32, i32) {
    %c0_i32 = arith.constant 0 : i32
    %c0_i32_0 = arith.constant 0 : i32
    %c0_i32_1 = arith.constant 0 : i32
    return %c0_i32, %c0_i32_0 : i32, i32
  }
  func.func @transform_3(%arg0: i32) -> (i32, i32) {
    %c0_i32 = arith.constant 0 : i32
    %c0_i32_0 = arith.constant 0 : i32
    return %arg0, %c0_i32 : i32, i32
  }
}

</mosaic_0001>

<bundles_post_ra>
// kernel: tpu_custom_call.1
= control target key start
LH: loop header
LB: loop body
LE: loop exit
PB: predicated region body
PF: predicated region fallthrough
CT: control target
= control target key end

     0   :  { %v332_v2 = vmov 0   ;;  %s445_s0 = inlined_call_operand.vmem [shape: s32[16,1], index: 0, kind: input, shape index: {}]   ;;  %s446_s1 = inlined_call_operand.vmem [shape: f32[1,128], index: 1, kind: input, shape index: {}]   ;;  %s447_s2 = inlined_call_operand.vmem [shape: f32[1,128], index: 2, kind: input, shape index: {}]   ;;  %s448_s3 = inlined_call_operand.hbm [shape: f32[16,128], index: 3, kind: output, shape index: {}]  }
   0x1   :  { %v15_v0 = vld [vmem:[%s445_s0] sm:$0xff]  ;;  %v16_v1 = vld [vmem:[%s445_s0 + $0x8] sm:$0xff]  ;;  %301 = vset.pattern.permute.xlu0 %v332_v2 }
   0x2   :  { %v17_v3 = vcvt.s32.f32 %v15_v0  ;;  %v18_v4 = vcvt.s32.f32 %v16_v1 }
   0x4   :  { %22 = vperm.xlu0 %301, %v17_v3  }
   0x5   :  { %8 = vsyncpa [#allocation3], 0  ;;  %v273_v5 = vld [vmem:[%s446_s1] ss:$0 sm:$0xff]  ;;  %v333_v29 = vmov 683565275  }
   0x6   :  { %v274_v6 = vld [vmem:[%s447_s2] ss:$0 sm:$0xff]  ;;  %v334_v33 = vmov 2475754826   ;;  %v335_v35 = vmov 2131351028  }
   0x7   :  { %v336_v37 = vmov 2102212464   ;;  %v337_v39 = vmov 920167782   ;;  %v338_v46 = vmov 1326507024  }
   0x8   :  { %27 = vperm.xlu0 %301, %v18_v4   ;;  %s339_s0 = smov [#allocation2]  }
   0x9   :  { %s262_s1 = sshll.u32 %s339_s0, 4  ;;  %s263_s1 = int_to_ptr.vmem [resolvable:$true] %s262_s1 }
   0xa   :  { %s310_s2 = scalar_lea.vmem %s263_s1, 256  ;;  %p315_p1 = scmp.lt.s32.totalorder %s263_s1, %s263_s1 }
   0xb   :  { %p311_p0 = scmp.ne.s32.totalorder %s263_s1, %s310_s2  ;;  %p316_p2 = scmp.lt.s32.totalorder %s310_s2, %s310_s2 }
   0xd   :  { %p317_p3 = por %p316_p2, %p315_p1 }
   0xf   :  { %p318_p4 = pnand %p317_p3, %p311_p0 }
  0x7f   :  { %v23_v7 = vpop.permute.xlu0 %22 }
  0x80   :  { %v36_v8 = vmul.f32 %v273_v5, %v23_v7 }
  0x82   :  { %v374_v9 = vadd.f32 %v274_v6, %v36_v8 }
  0x83   :  { %v28_v10 = vpop.permute.xlu0 %27 }
  0x84   :  { %v47_v11 = vand.u32 2147483647, %v374_v9  ;;  %v50_v12 = vand.u32 2139095040, %v374_v9  ;;  %v37_v13 = vmul.f32 %v273_v5, %v28_v10  ;;  %vm49_vm14 = vcmp.lt.s32.totalorder %v374_v9, 0 }
  0x86   :  { %v51_v14 = vshrl.u32 %v50_v12, 23  ;;  %v378_v15 = vadd.f32 %v274_v6, %v37_v13  ;;  %v54_v16 = vand.u32 8388607, %v47_v11  ;;  %vm48_vm15 = vcmp.le.f32.partialorder %v47_v11, 0.7853982 }
  0x88   :  { %v275_v17 = vadd.s32 4294967169, %v51_v14  ;;  %v154_v18 = vand.u32 2139095040, %v378_v15  ;;  %v55_v20 = vor.u32 8388608, %v54_v16  ;;  %v151_v22 = vand.u32 2147483647, %v378_v15 }
  0x8a   :  { %v57_v19 = vadd.s32 1, %v275_v17  ;;  %v155_v21 = vshrl.u32 %v154_v18, 23  ;;  %v384_v27 = vshll.u32 %v55_v20, 8  ;;  %v158_v31 = vand.u32 8388607, %v151_v22 }
  0x8c   :  { %vm58_vm0 = vcmp.gt.s32.totalorder %v57_v19, 0  ;;  %v279_v24 = vadd.s32 4294967169, %v155_v21  ;;  %v159_v61 = vor.u32 8388608, %v158_v31 }
  0x8d   :  { %v59_v23 = vsel %vm58_vm0, %v57_v19, 0  ;;  %vm153_vm0 = vcmp.lt.s32.totalorder %v378_v15, 0 }
  0x8e   :  { %v60_v25 = vshrl.u32 %v59_v23, 5  ;;  %v61_v26 = vand.u32 31, %v59_v23  ;;  %v161_v32 = vadd.s32 1, %v279_v24  ;;  %v199_v12 = vshll.u32 %v159_v61, 8 }
  0x90   :  { %v62_v28 = vsub.s32 32, %v61_v26  ;;  %v64_v30 = vshll.u32 %v333_v29, %v61_v26  ;;  %v67_v34 = vshll.u32 %v334_v33, %v61_v26  ;;  %v70_v36 = vshll.u32 %v335_v35, %v61_v26 }
  0x91   :  { %v73_v38 = vshll.u32 %v336_v37, %v61_v26  ;;  %v76_v40 = vshll.u32 %v337_v39, %v61_v26  ;;  %vm79_vm1 = vcmp.lt.s32.totalorder %v60_v25, 1  ;;  %vm81_vm2 = vcmp.lt.s32.totalorder %v60_v25, 3 }
  0x92   :  { %v65_v41 = vshrl.u32 %v334_v33, %v62_v28  ;;  %v68_v42 = vshrl.u32 %v335_v35, %v62_v28  ;;  %v71_v43 = vshrl.u32 %v336_v37, %v62_v28  ;;  %v63_v44 = vshrl.u32 %v333_v29, %v62_v28 }
  0x93   :  { %v74_v45 = vshrl.u32 %v337_v39, %v62_v28  ;;  %v77_v47 = vshrl.u32 %v338_v46, %v62_v28  ;;  %vm162_vm3 = vcmp.gt.s32.totalorder %v161_v32, 0  ;;  %vm82_vm4 = vcmp.lt.s32.totalorder %v60_v25, 4 }
  0x94   :  { %v66_v48 = vor.u32 %v65_v41, %v64_v30  ;;  %v69_v49 = vor.u32 %v68_v42, %v67_v34  ;;  %v72_v50 = vor.u32 %v71_v43, %v70_v36  ;;  %v163_v53 = vsel %vm162_vm3, %v161_v32, 0 }
  0x95   :  { %v75_v51 = vor.u32 %v74_v45, %v73_v38  ;;  %v78_v52 = vor.u32 %v77_v47, %v76_v40  ;;  %vm80_vm5 = vcmp.lt.s32.totalorder %v60_v25, 2  ;;  %v165_v0 = vand.u32 31, %v163_v53 }
  0x96   :  { %v83_v54 = vsel %vm79_vm1, %v63_v44, %v66_v48  ;;  %v84_v55 = vsel %vm82_vm4, %v72_v50, 2102212464  ;;  %v87_v56 = vsel %vm79_vm1, %v66_v48, %v69_v49  ;;  %v91_v57 = vsel %vm79_vm1, %v69_v49, %v72_v50 }
  0x97   :  { %v85_v58 = vsel %vm81_vm2, %v69_v49, %v84_v55  ;;  %v88_v59 = vsel %vm82_vm4, %v75_v51, 920167782  ;;  %v92_v60 = vsel %vm82_vm4, %v78_v52, 1326507024  ;;  %v164_v8 = vshrl.u32 %v163_v53, 5 }
  0x98   :  { %v89_v62 = vsel %vm81_vm2, %v72_v50, %v88_v59  ;;  %v93_v63 = vsel %vm81_vm2, %v75_v51, %v92_v60  ;;  %v86_v1 = vsel %vm80_vm5, %v83_v54, %v85_v58  ;;  %v166_v10 = vsub.s32 32, %v165_v0 }
  0x99   :  { %v90_v2 = vsel %vm80_vm5, %v87_v56, %v89_v62  ;;  %v94_v3 = vsel %vm80_vm5, %v91_v57, %v93_v63  ;;  %v102_v13 = vmul.u32 %v384_v27, %v86_v1  ;;  %v168_v14 = vshll.u32 %v333_v29, %v165_v0 }
  0x9a   :  { %v397_v4 = vmul.u32.u64.low %v384_v27, %v94_v3  ;;  %v398_v5 = vmul.u32.u64.high %v384_v27, %v94_v3, %v397_v4  ;;  %v401_v6 = vmul.u32.u64.low %v384_v27, %v90_v2  ;;  %v402_v7 = vmul.u32.u64.high %v384_v27, %v90_v2, %v401_v6 }
  0x9b   :  { %v171_v16 = vshll.u32 %v334_v33, %v165_v0  ;;  %v174_v17 = vshll.u32 %v335_v35, %v165_v0  ;;  %v169_v18 = vshrl.u32 %v334_v33, %v166_v10  ;;  %v172_v19 = vshrl.u32 %v335_v35, %v166_v10 }
  0x9c   :  { %v175_v20 = vshrl.u32 %v336_v37, %v166_v10  ;;  %v177_v21 = vshll.u32 %v336_v37, %v165_v0  ;;  %vm104_vm6 = vc.u32 %v398_v5, %v401_v6  ;;  %v105_v23 = vadd.s32 1, %v402_v7 }
  0x9d   :  { %v178_v24 = vshrl.u32 %v337_v39, %v166_v10  ;;  %v180_v25 = vshll.u32 %v337_v39, %v165_v0  ;;  %v170_v26 = vor.u32 %v169_v18, %v168_v14  ;;  %v173_v28 = vor.u32 %v172_v19, %v171_v16 }
  0x9e   :  { %v176_v30 = vor.u32 %v175_v20, %v174_v17  ;;  %v181_v31 = vshrl.u32 %v338_v46, %v166_v10  ;;  %v106_v27 = vsel %vm104_vm6, %v105_v23, %v402_v7  ;;  %vm183_vm7 = vcmp.lt.s32.totalorder %v164_v8, 1 }
  0x9f   :  { %v179_v32 = vor.u32 %v178_v24, %v177_v21  ;;  %vm186_vm8 = vcmp.lt.s32.totalorder %v164_v8, 4  ;;  %v107_v33 = vadd.s32 %v106_v27, %v102_v13  ;;  %vm185_vm9 = vcmp.lt.s32.totalorder %v164_v8, 3 }
  0xa0   :  { %v182_v34 = vor.u32 %v181_v31, %v180_v25  ;;  %v188_v35 = vsel %vm186_vm8, %v176_v30, 2102212464  ;;  %v167_v36 = vshrl.u32 %v333_v29, %v166_v10  ;;  %v191_v37 = vsel %vm183_vm7, %v170_v26, %v173_v28 }
  0xa1   :  { %v192_v38 = vsel %vm186_vm8, %v179_v32, 920167782  ;;  %v195_v40 = vsel %vm183_vm7, %v173_v28, %v176_v30  ;;  %v108_v41 = vadd.s32 536870912, %v107_v33  ;;  %vm184_vm10 = vcmp.lt.s32.totalorder %v164_v8, 2 }
  0xa2   :  { %v193_v39 = vsel %vm185_vm9, %v176_v30, %v192_v38  ;;  %v196_v42 = vsel %vm186_vm8, %v182_v34, 1326507024  ;;  %v187_v43 = vsel %vm183_vm7, %v167_v36, %v170_v26  ;;  %v189_v44 = vsel %vm185_vm9, %v173_v28, %v188_v35 }
  0xa3   :  { %v194_v45 = vsel %vm184_vm10, %v191_v37, %v193_v39  ;;  %v197_v46 = vsel %vm185_vm9, %v179_v32, %v196_v42  ;;  %v109_v47 = vshrl.u32 %v108_v41, 30  ;;  %v190_v53 = vsel %vm184_vm10, %v187_v43, %v189_v44 }
  0xa4   :  { %v198_v48 = vsel %vm184_vm10, %v195_v40, %v197_v46  ;;  %v412_v49 = vmul.u32.u64.low %v199_v12, %v194_v45  ;;  %v413_v50 = vmul.u32.u64.high %v199_v12, %v194_v45, %v412_v49  ;;  %v206_v56 = vmul.u32 %v199_v12, %v190_v53 }
  0xa5   :  { %v415_v51 = vmul.u32.u64.low %v199_v12, %v198_v48  ;;  %v416_v52 = vmul.u32.u64.high %v199_v12, %v198_v48, %v415_v51  ;;  %v110_v29 = vshll.u32 %v109_v47, 30  ;;  %v103_v4 = vadd.s32 %v401_v6, %v398_v5 }
  0xa6   :  { %v209_v55 = vadd.s32 1, %v413_v50  ;;  %v133_v31 = vsub.s32 4, %v109_v47  ;;  %vm431_vm1 = vcmp.le.f32.partialorder %v151_v22, 0.7853982  ;;  %vm139_vm5 = vweird.f32 %v374_v9 }
  0xa7   :  { %v111_v54 = vsub.s32 %v107_v33, %v110_v29  ;;  %vm208_vm11 = vc.u32 %v416_v52, %v412_v49  ;;  %v207_v28 = vadd.s32 %v412_v49, %v416_v52  ;;  %vm243_vm9 = vweird.f32 %v378_v15 }
  0xa8   :  { %v210_v58 = vsel %vm208_vm11, %v209_v55, %v413_v50  ;;  %v134_v38 = vsel %vm49_vm14, %v133_v31, %v109_v47 }
  0xa9   :  { %v113_v57 = vsub.s32 0, %v111_v54  ;;  %v211_v59 = vadd.s32 %v210_v58, %v206_v56  ;;  %v136_v42 = vsel %vm48_vm15, 0, %v134_v38 }
  0xaa   :  { %v140_v45 = vadd.s32 3, %v136_v42 }
  0xab   :  { %v276_v60 = vmin.u32 %v113_v57, %v111_v54  ;;  %v212_v61 = vadd.s32 536870912, %v211_v59 }
  0xac   :  { %v141_v49 = vand.u32 3, %v140_v45 }
  0xad   :  { %v115_v62 = vclz %v276_v60  ;;  %v213_v63 = vshrl.u32 %v212_v61, 30 }
  0xae   :  { %vm146_vm2 = vcmp.eq.s32.totalorder %v141_v49, 2  ;;  %vm143_vm3 = vcmp.eq.s32.totalorder %v141_v49, 0  ;;  %vm142_vm4 = vcmp.lt.s32.totalorder %v141_v49, 2 }
  0xaf   :  { %v277_v0 = vadd.s32 4294967294, %v115_v62  ;;  %v214_v1 = vshll.u32 %v213_v63, 30  ;;  %v237_v46 = vsub.s32 4, %v213_v63 }
  0xb1   :  { %vm278_vm12 = vcmp.lt.s32.totalorder %v277_v0, 0  ;;  %v215_v3 = vsub.s32 %v211_v59, %v214_v1  ;;  %v238_v50 = vsel %vm153_vm0, %v237_v46, %v213_v63 }
  0xb2   :  { %v118_v2 = vsel %vm278_vm12, 0, %v277_v0  ;;  %v240_v22 = vsel %vm431_vm1, 0, %v238_v50 }
  0xb3   :  { %v119_v7 = vsub.s32 32, %v118_v2  ;;  %v123_v8 = vsub.s32 4294967266, %v118_v2  ;;  %v217_v10 = vsub.s32 0, %v215_v3  ;;  %v120_v12 = vshll.u32 %v111_v54, %v118_v2 }
  0xb4   :  { %v244_v57 = vadd.s32 3, %v240_v22 }
  0xb5   :  { %v121_v13 = vshrl.u32 %v103_v4, %v119_v7  ;;  %v124_v14 = vadd.s32 127, %v123_v8  ;;  %v280_v16 = vmin.u32 %v217_v10, %v215_v3 }
  0xb6   :  { %v245_v59 = vand.u32 3, %v244_v57 }
  0xb7   :  { %v122_v17 = vor.u32 %v121_v13, %v120_v12  ;;  %v125_v18 = vshll.u32 %v124_v14, 23  ;;  %v219_v19 = vclz %v280_v16 }
  0xb8   :  { %vm250_vm6 = vcmp.eq.s32.totalorder %v245_v59, 2  ;;  %vm247_vm7 = vcmp.eq.s32.totalorder %v245_v59, 0  ;;  %vm246_vm8 = vcmp.lt.s32.totalorder %v245_v59, 2 }
  0xb9   :  { %v126_v20 = vor.u32 4788187, %v125_v18  ;;  %v281_v21 = vadd.s32 4294967294, %v219_v19  ;;  %v129_v24 = vcvt.s32.f32 %v122_v17 }
  0xbb   :  { %v127_v23 = vand.u32 2147483647, %v126_v20  ;;  %vm282_vm13 = vcmp.lt.s32.totalorder %v281_v21, 0 }
  0xbc   :  { %v222_v26 = vsel %vm282_vm13, 0, %v281_v21 }
  0xbd   :  { %v130_v25 = vmul.f32 %v129_v24, %v127_v23  ;;  %v223_v5 = vsub.s32 32, %v222_v26  ;;  %v227_v6 = vsub.s32 4294967266, %v222_v26  ;;  %v224_v27 = vshll.u32 %v215_v3, %v222_v26 }
  0xbf   :  { %v131_v30 = vxor.u32 2147483648, %v130_v25  ;;  %v225_v32 = vshrl.u32 %v207_v28, %v223_v5  ;;  %v228_v33 = vadd.s32 127, %v227_v6 }
  0xc1   :  { %v132_v34 = vsel %vm49_vm14, %v131_v30, %v130_v25  ;;  %v226_v36 = vor.u32 %v225_v32, %v224_v27  ;;  %v229_v37 = vshll.u32 %v228_v33, 23 }
  0xc2   :  { %v135_v35 = vsel %vm48_vm15, %v374_v9, %v132_v34 }
  0xc3   :  { %302 = vcosq.f32 %v135_v35  ;;  %v230_v40 = vor.u32 4788187, %v229_v37  ;;  %v233_v39 = vcvt.s32.f32 %v226_v36 }
  0xc4   :  { %304 = vsinq.f32 %v135_v35 }
  0xc5   :  { %v231_v41 = vand.u32 2147483647, %v230_v40 }
  0xc7   :  { %v234_v43 = vmul.f32 %v233_v39, %v231_v41 }
  0xc9   :  { %v235_v44 = vxor.u32 2147483648, %v234_v43 }
  0xcb   :  { %v236_v48 = vsel %vm153_vm0, %v235_v44, %v234_v43 }
  0xcc   :  { %v239_v47 = vsel %vm431_vm1, %v378_v15, %v236_v48 }
  0xcd   :  { %306 = vcosq.f32 %v239_v47 }
  0xce   :  { %308 = vsinq.f32 %v239_v47 }
  0xd0   :  { %v303_v51 = vpop.eup %302 }
  0xd1   :  { %v305_v52 = vpop.eup %304  ;;  %v147_v29 = vxor.u32 2147483648, %v303_v51 }
  0xd2   :  { %v144_v53 = vxor.u32 2147483648, %v305_v52 }
  0xd3   :  { %v148_v54 = vsel %vm146_vm2, %v147_v29, %v305_v52 }
  0xd4   :  { %v145_v55 = vsel %vm143_vm3, %v303_v51, %v144_v53 }
  0xd5   :  { %v149_v56 = vsel %vm142_vm4, %v145_v55, %v148_v54 }
  0xd6   :  { %v150_v58 = vsel %vm139_vm5, nan, %v149_v56 }
  0xd7   :  { %255 = vst [vmem:[#allocation2] sm:$0xff] %v150_v58 }
  0xda   :  { %v307_v60 = vpop.eup %306 }
  0xdb   :  { %v309_v61 = vpop.eup %308  ;;  %v251_v62 = vxor.u32 2147483648, %v307_v60 }
  0xdc   :  { %v248_v63 = vxor.u32 2147483648, %v309_v61 }
  0xdd   :  { %v252_v0 = vsel %vm250_vm6, %v251_v62, %v309_v61 }
  0xde   :  { %v249_v1 = vsel %vm247_vm7, %v307_v60, %v248_v63 }
  0xdf   :  { %v253_v2 = vsel %vm246_vm8, %v249_v1, %v252_v0 }
  0xe0   :  { %v254_v9 = vsel %vm243_vm9, nan, %v253_v2 }
  0xe1   :  { %256 = vst [vmem:[#allocation2 + $0x8] sm:$0xff] %v254_v9 }
  0xe2   :  { %321 = shalt.err (!%p318_p4)
}
  0xe3   :  { %s340_s20 = smov 128   ;;  %s341_s21 = smov 8  }
  0xe4   :  { %268 = dma.vmem_to_hbm [thread:$0]  %s263_s1, 256, %s448_s3, [#allocation3], %s340_s20, %s340_s20, %s341_s21  }
  0xe5   :  { %330 = dma.done.wait [#allocation3], 256  }
  0xe6   :  { %331 = vsyncadd [#allocation3], 4294967040 }
  0xe7   :  { %272 = vsyncpa [#allocation3], 1 }

</bundles_post_ra>
